<compile_context>
chip_gen: v6e
topology: v6e:2x2x1
jax: 0.10.0
libtpu: 0.0.40
codegen_flags: <defaults>
</compile_context>

<pallas_src>
import jax
import jax.numpy as jnp
import numpy as np
from jax.experimental import pallas as pl
from jax.experimental.pallas import tpu as pltpu

_LANE = 128


def _round_up(v, m):
    return ((v + m - 1) // m) * m


def _vmem_plan():
    """Returns (tile-search budget, vmem_limit_bytes, max point tile) per generation."""
    try:
        cap = int(getattr(pltpu.get_tpu_info(), "vmem_capacity_bytes", 0))
    except Exception:
        cap = 0
    if cap >= 100 * 1024 * 1024:          # v5e / v6e: 128 MiB physical VMEM
        return 72 * 1024 * 1024, 96 * 1024 * 1024, 2048
    # v7x (64 MiB per TensorCore) or unknown: stay conservative.
    return 28 * 1024 * 1024, 40 * 1024 * 1024, 1024


def _sanitize_point_tile(tn, n_points):
    """Clamp/round a user-supplied tile so the (8,128) BlockSpec rule always holds."""
    if n_points <= _LANE:
        return n_points
    tn = max(_LANE, min(int(tn), _round_up(n_points, _LANE)))
    return (tn // _LANE) * _LANE


def _choose_point_tile(n_points, c_in, in_itemsize, padded_out_dims, param_bytes,
                       budget_bytes, tn_cap):
    """Largest point tile (multiple of 128) whose working set fits the budget."""
    if n_points <= _LANE:
        return n_points
    c_max = max(padded_out_dims)
    per_pt = 2 * c_in * in_itemsize + 3 * c_max * 4   # dbl-buffered x + live f32 temps
    fixed = param_bytes + padded_out_dims[-1] * _LANE * 4  # params + running-max scratch
    tn = min(_round_up(n_points, _LANE), tn_cap)
    tn = (tn // _LANE) * _LANE
    while tn > _LANE and fixed + per_pt * tn > budget_bytes:
        tn -= _LANE
    return max(tn, _LANE)


def _pad_params(weights, biases):
    """Pad channel dims to 128, cast weights to bf16 (MXU) and biases to f32.

    weights[i]: (C_out_i, C_in_i)  -- PyTorch Conv1d weight squeezed.
    biases[i]:  (C_out_i,)
    Layer 0 keeps its true input dim (matches the raw NCW x block).
    """
    pw, pb = [], []
    for i, (w, b) in enumerate(zip(weights, biases)):
        c_out, c_in = w.shape
        c_out_p = _round_up(c_out, _LANE)
        c_in_p = c_in if i == 0 else _round_up(c_in, _LANE)
        wp = jnp.zeros((c_out_p, c_in_p), jnp.bfloat16)
        wp = wp.at[:c_out, :c_in].set(w.astype(jnp.bfloat16))
        bp = jnp.zeros((c_out_p, 1), jnp.float32)
        bp = bp.at[:c_out, 0].set(b.astype(jnp.float32))
        pw.append(wp)
        pb.append(bp)
    return pw, pb


def _make_kernel(num_layers, n_pt, n_split, tile_n, fold_w, mask_tail, valid_tail):
    n_chunks = tile_n // fold_w

    def kernel(x_ref, *refs):
        # refs = (w0, b0, ..., w_{L-1}, b_{L-1}, out_ref, max_scratch)
        params = refs[:-2]
        out_ref = refs[-2]
        m_ref = refs[-1]

        s = pl.program_id(0)          # point-range split (feeds v7x's 2nd core)
        p = pl.program_id(2)          # point tile within the split

        @pl.when(p == 0)
        def _init():
            m_ref[...] = jnp.full(m_ref.shape, -jnp.inf, jnp.float32)

        # x block: (c_in, TN) -- channels in sublanes, points in lanes (raw NCW).
        h_in = x_ref[0].astype(jnp.bfloat16)
        acc = None
        for i in range(num_layers):
            w = params[2 * i][...]                     # (C_i_pad, C_{i-1}_pad) bf16
            acc = jnp.dot(w, h_in, preferred_element_type=jnp.float32)
            if i < num_layers - 1:
                acc = jnp.maximum(acc + params[2 * i + 1][...], 0.0)
                h_in = acc.astype(jnp.bfloat16)
            # Last layer: bias folded into the finalize (max(x+b) == max(x)+b),
            # so the hot loop never broadcasts the widest bias.

        def fold(a):
            # Pure-VPU running max: fold TN lanes into the (C_pad, fold_w) scratch.
            m = m_ref[...]
            for k in range(n_chunks):
                m = jnp.maximum(m, a[:, k * fold_w:(k + 1) * fold_w])
            m_ref[...] = m

        if mask_tail:
            is_tail = jnp.logical_and(s == n_split - 1, p == n_pt - 1)

            @pl.when(is_tail)
            def _fold_masked():
                # Lane-only (1, TN) compare; broadcast happens inside the where.
                col = jax.lax.broadcasted_iota(jnp.int32, (1, tile_n), 1)
                fold(jnp.where(col < valid_tail, acc, -jnp.inf))

            @pl.when(jnp.logical_not(is_tail))
            def _fold_full():
                fold(acc)
        else:
            fold(acc)

        @pl.when(p == n_pt - 1)
        def _finalize():
            # Once per (split, batch): last-layer bias, XLU lane-reduce, and a
            # single lane-dense (1, 1, 1, C_pad) store.
            res = m_ref[...] + params[2 * num_layers - 1][...]
            out_ref[...] = (jnp.max(res, axis=1)
                            .reshape(out_ref.shape)
                            .astype(out_ref.dtype))

    return kernel


def pointnet_fea_new(x_ncw, weights, biases, *, point_tile=None, point_splits=None):
    """Forward pass matching PyTorch PointNetFeaNew (batchnorm=False).

    Args:
      x_ncw:   (B, point_dim, N), PyTorch NCW layout, consumed in place.
               (Pass bf16 on HBM-bound chips like v5e to halve input traffic;
               the kernel casts operands to bf16 before the MXU either way.)
      weights: list of (C_out_i, C_in_i) arrays (PyTorch Conv1d weight squeezed).
      biases:  list of (C_out_i,) arrays.

    Returns:
      (B, net_layers[-1]) float32.
    """
    num_layers = len(weights)
    B, c_in, N = x_ncw.shape
    c_out = weights[-1].shape[0]

    pw, pb = _pad_params(weights, biases)
    c_out_pad = pw[-1].shape[0]

    budget, vmem_limit, tn_cap = _vmem_plan()
    param_bytes = (sum(int(np.prod(w.shape)) * 2 for w in pw)
                   + sum(int(np.prod(b.shape)) * 4 for b in pb))

    if point_tile is not None:
        tn = _sanitize_point_tile(point_tile, N)
    else:
        tn = _choose_point_tile(N, c_in, x_ncw.dtype.itemsize,
                                [w.shape[0] for w in pw], param_bytes, budget, tn_cap)

    total_tiles = pl.cdiv(N, tn)
    if point_splits is None:
        # v7x has 2 TensorCores; when the batch axis can't balance them, split points.
        point_splits = 2 if (B % 2 == 1 and total_tiles >= 2) else 1
    n_split = point_splits if (point_splits >= 1 and total_tiles % point_splits == 0) else 1
    n_pt = total_tiles // n_split

    fold_w = tn if tn < _LANE else _LANE
    mask_tail = (N % tn) != 0
    valid_tail = N - (total_tiles - 1) * tn

    kernel = _make_kernel(num_layers, n_pt, n_split, tn, fold_w, mask_tail, valid_tail)

    # x is tiled over (split, batch, point-tile); weights/biases are constants
    # placed whole in VMEM (no per-step pipelining / double buffering).
    vmem_full = pl.BlockSpec(memory_space=pltpu.MemorySpace.VMEM)
    in_specs = [pl.BlockSpec((1, c_in, tn), lambda s, b, p: (b, 0, s * n_pt + p))]
    flat_params = []
    for w, bia in zip(pw, pb):
        in_specs += [vmem_full, vmem_full]
        flat_params += [w, bia]

    out = pl.pallas_call(
        kernel,
        out_shape=jax.ShapeDtypeStruct((n_split, B, 1, c_out_pad), jnp.float32),
        grid_spec=pltpu.PrefetchScalarGridSpec(
            num_scalar_prefetch=0,
            grid=(n_split, B, n_pt),
            in_specs=in_specs,
            # Lane-dense output block, constant over the points axis (written
            # once per (split, batch) in the finalize).
            out_specs=pl.BlockSpec((1, 1, 1, c_out_pad), lambda s, b, p: (s, b, 0, 0)),
            scratch_shapes=[pltpu.VMEM((c_out_pad, fold_w), jnp.float32)],
        ),
        compiler_params=pltpu.CompilerParams(
            dimension_semantics=("parallel", "parallel", "arbitrary"),
            vmem_limit_bytes=vmem_limit,
        ),
    )(x_ncw, *flat_params)

    out = jnp.max(out, axis=0)            # combine the point-range splits
    return out[:, 0, :c_out]              # drop channel padding -> (B, C_out)


def init_params(point_dim, net_layers, key):
    """Deterministic synthetic parameters in PyTorch Conv1d layout."""
    weights, biases = [], []
    dims = [point_dim] + list(net_layers)
    for i in range(len(net_layers)):
        c_i, c_o = dims[i], dims[i + 1]
        key, kw, kb = jax.random.split(key, 3)
        scale = 1.0 / np.sqrt(c_i)
        weights.append(jax.random.uniform(kw, (c_o, c_i), jnp.float32, -scale, scale))
        biases.append(jax.random.uniform(kb, (c_o,), jnp.float32, -scale, scale))
    return weights, biases


def reference_forward(x_ncw, weights, biases):
    """Pure-JAX reference mirroring the PyTorch forward (same bf16 operand casts)."""
    h = x_ncw.astype(jnp.bfloat16)                       # (B, C, N)
    L = len(weights)
    h32 = None
    for i in range(L):
        w = weights[i].astype(jnp.bfloat16)              # (C_out, C_in)
        h32 = jnp.einsum("oc,bcn->bon", w, h, preferred_element_type=jnp.float32)
        h32 = h32 + biases[i][None, :, None]
        if i < L - 1:
            h32 = jnp.maximum(h32, 0.0)
        h = h32.astype(jnp.bfloat16)
    return jnp.max(h32, axis=2)                          # (B, C_out)


if __name__ == "__main__":
    # TODO(synk): BatchNorm1d branch (batchnorm=True) not implemented; the
    # module default (batchnorm=False -> Identity) is what is modeled here.
    point_dim = 4
    net_layers = [32, 64]

    key = jax.random.PRNGKey(0)
    key, kp = jax.random.split(key)
    weights, biases = init_params(point_dim, net_layers, kp)

    fwd = jax.jit(pointnet_fea_new, static_argnames=("point_tile", "point_splits"))

    # Case 1: tiny shapes (B=2, N=16) -- single point tile, no tail mask.
    B, N = 2, 16
    key, kx = jax.random.split(key)
    x = jax.random.normal(kx, (B, point_dim, N), jnp.float32)   # PyTorch NCW input
    out = jax.block_until_ready(fwd(x, weights, biases))
    assert out.shape == (B, net_layers[-1])
    np.testing.assert_allclose(np.asarray(out),
                               np.asarray(reference_forward(x, weights, biases)),
                               rtol=1e-2, atol=1e-2)

    # Case 2: exercises the multi-tile running max, the runtime-gated tail
    # -inf mask, and the points-split "parallel" axis (B odd -> split=2).
    B2, N2 = 1, 2000
    key, kx2 = jax.random.split(key)
    x2 = jax.random.normal(kx2, (B2, point_dim, N2), jnp.float32)
    out2 = jax.block_until_ready(fwd(x2, weights, biases, point_tile=256))
    assert out2.shape == (B2, net_layers[-1])
    np.testing.assert_allclose(np.asarray(out2),
                               np.asarray(reference_forward(x2, weights, biases)),
                               rtol=1e-2, atol=1e-2)

    print("KERNEL_OK")
</pallas_src>

<mosaic_0001>
module attributes {stable_mosaic.version = 11 : i64} {
  func.func @kernel(%arg0: i32, %arg1: i32, %arg2: i32, %arg3: memref<1x4x16xf32, #tpu.memory_space<vmem>>, %arg4: memref<128x4xbf16, #tpu.memory_space<vmem>>, %arg5: memref<128x1xf32, #tpu.memory_space<vmem>>, %arg6: memref<128x128xbf16, #tpu.memory_space<vmem>>, %arg7: memref<128x1xf32, #tpu.memory_space<vmem>>, %arg8: memref<1x1x1x128xf32, #tpu.memory_space<vmem>>, %arg9: memref<128x16xf32, #tpu.memory_space<vmem>>) attributes {dimension_semantics = [#tpu.dimension_semantics<parallel>, #tpu.dimension_semantics<parallel>, #tpu.dimension_semantics<arbitrary>], iteration_bounds = array<i64: 1, 2, 1>, scalar_prefetch = 0 : i64, scratch_operands = 1 : i64, tpu.core_type = #tpu.core_type<tc>, window_params = [{transform_indices = @transform_0, window_bounds = array<i64: 1, 4, 16>}, {pipeline_mode = #tpu.pipeline_mode<synchronous>, transform_indices = @transform_1, window_bounds = array<i64: 128, 4>}, {pipeline_mode = #tpu.pipeline_mode<synchronous>, transform_indices = @transform_2, window_bounds = array<i64: 128, 1>}, {pipeline_mode = #tpu.pipeline_mode<synchronous>, transform_indices = @transform_3, window_bounds = array<i64: 128, 128>}, {pipeline_mode = #tpu.pipeline_mode<synchronous>, transform_indices = @transform_4, window_bounds = array<i64: 128, 1>}, {transform_indices = @transform_5, window_bounds = array<i64: 1, 1, 1, 128>}]} {
    %c0_i32 = arith.constant 0 : i32
    %0 = arith.cmpi eq, %arg2, %c0_i32 : i32
    %1 = arith.extui %0 : i1 to i32
    %c0_i32_0 = arith.constant 0 : i32
    %2 = arith.cmpi ne, %1, %c0_i32_0 : i32
    scf.if %2 {
      %cst_17 = arith.constant 0xFF800000 : f32
      %22 = vector.broadcast %cst_17 : f32 to vector<128x16xf32>
      %c0_18 = arith.constant 0 : index
      %c0_19 = arith.constant 0 : index
      %23 = vector.load %arg9[%c0_18, %c0_19] : memref<128x16xf32, #tpu.memory_space<vmem>>, vector<128x16xf32>
      tpu.vector_store %arg9[%c0_18, %c0_19], %22 {strides = array<i32>} : memref<128x16xf32, #tpu.memory_space<vmem>>, vector<128x16xf32>,
    } else {
    }
    %c0 = arith.constant 0 : index
    %c0_1 = arith.constant 0 : index
    %c0_2 = arith.constant 0 : index
    %3 = vector.load %arg3[%c0, %c0_1, %c0_2] : memref<1x4x16xf32, #tpu.memory_space<vmem>>, vector<1x4x16xf32>
    %4 = vector.shape_cast %3 : vector<1x4x16xf32> to vector<4x16xf32>
    %5 = arith.truncf %4 : vector<4x16xf32> to vector<4x16xbf16>
    %c0_3 = arith.constant 0 : index
    %c0_4 = arith.constant 0 : index
    %6 = vector.load %arg4[%c0_3, %c0_4] : memref<128x4xbf16, #tpu.memory_space<vmem>>, vector<128x4xbf16>
    %cst = arith.constant dense<0.000000e+00> : vector<128x16xf32>
    %7 = tpu.matmul %6, %5, %cst {dimension_numbers = #tpu.dot_dimension_numbers<[1], [0], [0], [1], [0, 0, 1, 1], [], []>} : vector<128x4xbf16>, vector<4x16xbf16>, vector<128x16xf32> -> vector<128x16xf32>
    %c0_5 = arith.constant 0 : index
    %c0_6 = arith.constant 0 : index
    %8 = vector.load %arg5[%c0_5, %c0_6] : memref<128x1xf32, #tpu.memory_space<vmem>>, vector<128x1xf32>
    %9 = vector.broadcast %8 : vector<128x1xf32> to vector<128x16xf32>
    %10 = arith.addf %7, %9 : vector<128x16xf32>
    %cst_7 = arith.constant 0.000000e+00 : f32
    %11 = vector.broadcast %cst_7 : f32 to vector<128x16xf32>
    %12 = arith.maximumf %10, %11 : vector<128x16xf32>
    %13 = arith.truncf %12 : vector<128x16xf32> to vector<128x16xbf16>
    %c0_8 = arith.constant 0 : index
    %c0_9 = arith.constant 0 : index
    %14 = vector.load %arg6[%c0_8, %c0_9] : memref<128x128xbf16, #tpu.memory_space<vmem>>, vector<128x128xbf16>
    %cst_10 = arith.constant dense<0.000000e+00> : vector<128x16xf32>
    %15 = tpu.matmul %14, %13, %cst_10 {dimension_numbers = #tpu.dot_dimension_numbers<[1], [0], [0], [1], [0, 0, 1, 1], [], []>} : vector<128x128xbf16>, vector<128x16xbf16>, vector<128x16xf32> -> vector<128x16xf32>
    %c0_11 = arith.constant 0 : index
    %c0_12 = arith.constant 0 : index
    %16 = vector.load %arg9[%c0_11, %c0_12] : memref<128x16xf32, #tpu.memory_space<vmem>>, vector<128x16xf32>
    %17 = arith.maximumf %16, %15 : vector<128x16xf32>
    %c0_13 = arith.constant 0 : index
    %c0_14 = arith.constant 0 : index
    %18 = vector.load %arg9[%c0_13, %c0_14] : memref<128x16xf32, #tpu.memory_space<vmem>>, vector<128x16xf32>
    tpu.vector_store %arg9[%c0_13, %c0_14], %17 {strides = array<i32>} : memref<128x16xf32, #tpu.memory_space<vmem>>, vector<128x16xf32>,
    %c0_i32_15 = arith.constant 0 : i32
    %19 = arith.cmpi eq, %arg2, %c0_i32_15 : i32
    %20 = arith.extui %19 : i1 to i32
    %c0_i32_16 = arith.constant 0 : i32
    %21 = arith.cmpi ne, %20, %c0_i32_16 : i32
    scf.if %21 {
      %c0_17 = arith.constant 0 : index
      %c0_18 = arith.constant 0 : index
      %22 = vector.load %arg9[%c0_17, %c0_18] : memref<128x16xf32, #tpu.memory_space<vmem>>, vector<128x16xf32>
      %c0_19 = arith.constant 0 : index
      %c0_20 = arith.constant 0 : index
      %23 = vector.load %arg7[%c0_19, %c0_20] : memref<128x1xf32, #tpu.memory_space<vmem>>, vector<128x1xf32>
      %24 = vector.broadcast %23 : vector<128x1xf32> to vector<128x16xf32>
      %25 = arith.addf %22, %24 : vector<128x16xf32>
      %cst_21 = arith.constant dense<0xFF800000> : vector<128xf32>
      %26 = vector.multi_reduction <maximumf>, %25, %cst_21 [1] : vector<128x16xf32> to vector<128xf32>
      %27 = vector.shape_cast %26 : vector<128xf32> to vector<1x1x1x128xf32>
      %c0_22 = arith.constant 0 : index
      %c0_23 = arith.constant 0 : index
      %c0_24 = arith.constant 0 : index
      %c0_25 = arith.constant 0 : index
      %28 = vector.load %arg8[%c0_22, %c0_23, %c0_24, %c0_25] : memref<1x1x1x128xf32, #tpu.memory_space<vmem>>, vector<1x1x1x128xf32>
      tpu.vector_store %arg8[%c0_22, %c0_23, %c0_24, %c0_25], %27 {strides = array<i32>} : memref<1x1x1x128xf32, #tpu.memory_space<vmem>>, vector<1x1x1x128xf32>,
    } else {
    }
    return
  }
  func.func @transform_0(%arg0: i32, %arg1: i32, %arg2: i32) -> (i32, i32, i32) {
    %c1_i32 = arith.constant 1 : i32
    %0 = arith.muli %arg0, %c1_i32 : i32
    %1 = arith.addi %0, %arg2 : i32
    %c0_i32 = arith.constant 0 : i32
    %c0_i32_0 = arith.constant 0 : i32
    return %arg1, %c0_i32, %1 : i32, i32, i32
  }
  func.func @transform_1(%arg0: i32, %arg1: i32, %arg2: i32) -> (i32, i32) {
    %c0_i32 = arith.constant 0 : i32
    %c0_i32_0 = arith.constant 0 : i32
    %c0_i32_1 = arith.constant 0 : i32
    return %c0_i32, %c0_i32_0 : i32, i32
  }
  func.func @transform_2(%arg0: i32, %arg1: i32, %arg2: i32) -> (i32, i32) {
    %c0_i32 = arith.constant 0 : i32
    %c0_i32_0 = arith.constant 0 : i32
    %c0_i32_1 = arith.constant 0 : i32
    return %c0_i32, %c0_i32_0 : i32, i32
  }
  func.func @transform_3(%arg0: i32, %arg1: i32, %arg2: i32) -> (i32, i32) {
    %c0_i32 = arith.constant 0 : i32
    %c0_i32_0 = arith.constant 0 : i32
    %c0_i32_1 = arith.constant 0 : i32
    return %c0_i32, %c0_i32_0 : i32, i32
  }
  func.func @transform_4(%arg0: i32, %arg1: i32, %arg2: i32) -> (i32, i32) {
    %c0_i32 = arith.constant 0 : i32
    %c0_i32_0 = arith.constant 0 : i32
    %c0_i32_1 = arith.constant 0 : i32
    return %c0_i32, %c0_i32_0 : i32, i32
  }
  func.func @transform_5(%arg0: i32, %arg1: i32, %arg2: i32) -> (i32, i32, i32, i32) {
    %c0_i32 = arith.constant 0 : i32
    %c0_i32_0 = arith.constant 0 : i32
    %c0_i32_1 = arith.constant 0 : i32
    return %arg0, %arg1, %c0_i32, %c0_i32_0 : i32, i32, i32, i32
  }
}

</mosaic_0001>

<bundles_post_ra>
// kernel: pointnet_fea_new.1
= control target key start
LH: loop header
LB: loop body
LE: loop exit
PB: predicated region body
PF: predicated region fallthrough
CT: control target
= control target key end

     0   :  { %s1410_s18 = smov 0   ;;  %s1412_s19 = smov 0   ;;  %s1704_s0 = inlined_call_operand.vmem [shape: f32[2,4,16], index: 0, kind: input, shape index: {}]   ;;  %s1705_s1 = inlined_call_operand.vmem [shape: bf16[128,4], index: 1, kind: input, shape index: {}]   ;;  %s1706_s2 = inlined_call_operand.vmem [shape: f32[128,1], index: 2, kind: input, shape index: {}]   ;;  %s1707_s3 = inlined_call_operand.vmem [shape: bf16[128,128], index: 3, kind: input, shape index: {}]   ;;  %s1708_s4 = inlined_call_operand.vmem [shape: f32[128,1], index: 4, kind: input, shape index: {}]   ;;  %s1709_s5 = inlined_call_operand.vmem [shape: f32[1,2,1,128], index: 5, kind: output, shape index: {}]  }
   0x1   :  { %s1414_s20 = smov 0  }
   0x2 LB: > { %s30_s21 = sadd.s32 1, %s1372_s19  ;;  %p1190_p0 = scmp.ge.s32.totalorder %s1376_s20, 1  ;;  %s1376_s20 = sphi %s1414_s20, %s15_s20   ;;  %s1372_s19 = sphi %s1412_s19, %s1711_s19   ;;  %s1368_s18 = sphi %s1410_s18, %s1710_s18  }
   0x3   : > { %p32_p1 = scmp.ge.s32.totalorder %s30_s21, 2  ;;  %p216_p2 = scmp.lt.s32.totalorder %s1376_s20, 3 }
   0x5   : > { %s1713_s21 = smov (%p32_p1, %s30_s21), 0  ;;  %p217_p3 = pnand %p1190_p0, %p216_p2 }
   0x6   : > { %p250_p4 = scmp.lt.s32.totalorder (!%p217_p3), %s1368_s18, 1 }
   0x7   : > { %220 = sbr.rel (%p217_p3) target bundleno = 662 (0x296), region = 40 }
   0xc   : > { %v1338_v0 = vld [vmem:[%s1705_s1] sm:$0xff]   ;;  %vm441_vm0 = vcmask 31744   ;;  %s1715_s18 = smov (!%p250_p4, %s1368_s18), 1  ;;  %v1378_v1 = vmov 0   ;;  %vm466_vm1 = vcmask 1041408   ;;  %v319_v4 = vld [vmem:[%s1706_s2 + $0x70] sm:$0xff] }
   0xd   : > { %1245 = vmatprep.mubr.msk.bf16.mxu0 %vm441_vm0, %v1338_v0  ;;  %s1191_s24 = sshll.u32 %s1715_s18, 2  ;;  %1336 = vset.pattern.permute.xlu0 %v1378_v1  ;;  %v1339_v6 = vld [vmem:[%s1705_s1 + $0x8] sm:$0xff]   ;;  %v317_v7 = vld [vmem:[%s1706_s2 + $0x60] sm:$0xff]  ;;  %v1340_v8 = vld [vmem:[%s1705_s1 + $0x10] sm:$0xff]   ;;  %vm270_vm2 = vcmask 130048   ;;  %v1379_v46 = vmov -inf   ;;  %s264_s15 = scalar_lea.vmem %s1709_s5, %s1715_s18 }
   0xe   : > { %1337 = vset.pattern.permute.xlu1 %v1378_v1  ;;  %s256_s27 = scalar_lea.vmem %s1704_s0, %s1191_s24  ;;  %393 = vperm.xlu0 %1336, %v319_v4   ;;  %v320_v9 = vld [vmem:[%s1706_s2 + $0x78] sm:$0xff]  ;;  %v318_v10 = vld [vmem:[%s1706_s2 + $0x68] sm:$0xff]  ;;  %v315_v11 = vld [vmem:[%s1706_s2 + $0x50] sm:$0xff]  ;;  %273 = vst.msk [vmem:[#allocation2 + $0x10] sm:$0xff] %vm270_vm2, %v1379_v46  ;;  %vm1007_vm3 = vcmask 130112   ;;  %vm1014_vm4 = vcmask 195712  }
   0xf   : > { %v287_v2 = vld [vmem:[%s256_s27] sm:$0xf]  ;;  %383 = vperm.xlu1 %1337, %v317_v7   ;;  %v316_v12 = vld [vmem:[%s1706_s2 + $0x58] sm:$0xff]  ;;  %v314_v16 = vld [vmem:[%s1706_s2 + $0x48] sm:$0xff]  ;;  %271 = vst.msk [vmem:[#allocation2] sm:$0xff] %vm270_vm2, %v1379_v46  ;;  %vm1021_vm5 = vcmask 261312  }
  0x10   : > { %v288_v3 = vpack.c.bf16 %v287_v2, %v287_v2  ;;  %v1341_v13 = vld [vmem:[%s1705_s1 + $0x18] sm:$0xff]   ;;  %v1342_v14 = vld [vmem:[%s1705_s1 + $0x20] sm:$0xff]   ;;  %v311_v17 = vld [vmem:[%s1706_s2 + $0x30] sm:$0xff]  ;;  %272 = vst.msk [vmem:[#allocation2 + $0x8] sm:$0xff] %vm270_vm2, %v1379_v46  ;;  %vm1028_vm6 = vcmask 326912   ;;  %vm1035_vm7 = vcmask 392512  }
  0x11   : > { %v313_v15 = vld [vmem:[%s1706_s2 + $0x40] sm:$0xff]  ;;  %v312_v18 = vld [vmem:[%s1706_s2 + $0x38] sm:$0xff]  ;;  %v1343_v19 = vld [vmem:[%s1705_s1 + $0x28] sm:$0xff]   ;;  %274 = vst.msk [vmem:[#allocation2 + $0x18] sm:$0xff] %vm270_vm2, %v1379_v46  ;;  %vm1042_vm8 = vcmask 458112   ;;  %vm1049_vm9 = vcmask 523712  }
  0x12   : > { %1309 = vmatprep.subr.msk.bf16.mxu0 %vm466_vm1, %v288_v3  ;;  %v468_v5 = vsel %vm466_vm1, %v288_v3, 0  ;;  %398 = vperm.xlu0 %1336, %v320_v9   ;;  %v1344_v20 = vld [vmem:[%s1705_s1 + $0x30] sm:$0xff]   ;;  %v309_v21 = vld [vmem:[%s1706_s2 + $0x20] sm:$0xff]  ;;  %v310_v22 = vld [vmem:[%s1706_s2 + $0x28] sm:$0xff]  ;;  %275 = vst.msk [vmem:[#allocation2 + $0x20] sm:$0xff] %vm270_vm2, %v1379_v46  ;;  %vm1056_vm10 = vcmask 589312  }
  0x13   : > { %1244 = vmatpush3.bf16.msra.mxu0 %v468_v5  ;;  %388 = vperm.xlu1 %1337, %v318_v10   ;;  %v307_v23 = vld [vmem:[%s1706_s2 + $0x10] sm:$0xff]  ;;  %v308_v24 = vld [vmem:[%s1706_s2 + $0x18] sm:$0xff]  ;;  %v305_v26 = vld [vmem:[%s1706_s2] sm:$0xff]  ;;  %276 = vst.msk [vmem:[#allocation2 + $0x28] sm:$0xff] %vm270_vm2, %v1379_v46  ;;  %vm1063_vm11 = vcmask 654912   ;;  %vm1070_vm12 = vcmask 720512  }
  0x14   : > { %v1345_v25 = vld [vmem:[%s1705_s1 + $0x38] sm:$0xff]   ;;  %v306_v27 = vld [vmem:[%s1706_s2 + $0x8] sm:$0xff]  ;;  %v820_v28 = vld [vmem:[%s1708_s4] sm:$0xff]  ;;  %277 = vst.msk [vmem:[#allocation2 + $0x30] sm:$0xff] %vm270_vm2, %v1379_v46  ;;  %vm1077_vm13 = vcmask 786112   ;;  %vm1084_vm14 = vcmask 851712  }
  0x15   : > { %v821_v29 = vld [vmem:[%s1708_s4 + $0x8] sm:$0xff]  ;;  %v822_v30 = vld [vmem:[%s1708_s4 + $0x10] sm:$0xff]  ;;  %v823_v31 = vld [vmem:[%s1708_s4 + $0x18] sm:$0xff]  ;;  %278 = vst.msk [vmem:[#allocation2 + $0x38] sm:$0xff] %vm270_vm2, %v1379_v46  ;;  %vm1091_vm15 = vcmask 917312   ;;  %vm1105_vm1 = vcmask 1048512  }
  0x16   : > { %1246 = vmatmul.mubr.msk.bf16.vlgmr.msra.gmra.mxu0 %vm441_vm0, %v1339_v6  ;;  %373 = vperm.xlu0 %1336, %v315_v11   ;;  %v824_v32 = vld [vmem:[%s1708_s4 + $0x20] sm:$0xff]  ;;  %v825_v33 = vld [vmem:[%s1708_s4 + $0x28] sm:$0xff]  ;;  %v826_v34 = vld [vmem:[%s1708_s4 + $0x30] sm:$0xff]  ;;  %279 = vst.msk [vmem:[#allocation2 + $0x40] sm:$0xff] %vm270_vm2, %v1379_v46 }
  0x17   : > { %1249 = vmatprep.mubr.msk.bf16.mxu0 %vm441_vm0, %v1340_v8  ;;  %378 = vperm.xlu1 %1337, %v316_v12   ;;  %v827_v35 = vld [vmem:[%s1708_s4 + $0x38] sm:$0xff]  ;;  %v828_v36 = vld [vmem:[%s1708_s4 + $0x40] sm:$0xff]  ;;  %v829_v37 = vld [vmem:[%s1708_s4 + $0x48] sm:$0xff]  ;;  %280 = vst.msk [vmem:[#allocation2 + $0x48] sm:$0xff] %vm270_vm2, %v1379_v46 }
  0x18   : > { %v830_v38 = vld [vmem:[%s1708_s4 + $0x50] sm:$0xff]  ;;  %v831_v39 = vld [vmem:[%s1708_s4 + $0x58] sm:$0xff]  ;;  %v832_v40 = vld [vmem:[%s1708_s4 + $0x60] sm:$0xff]  ;;  %281 = vst.msk [vmem:[#allocation2 + $0x50] sm:$0xff] %vm270_vm2, %v1379_v46 }
  0x19   : > { %v833_v41 = vld [vmem:[%s1708_s4 + $0x68] sm:$0xff]  ;;  %v834_v42 = vld [vmem:[%s1708_s4 + $0x70] sm:$0xff]  ;;  %v835_v43 = vld [vmem:[%s1708_s4 + $0x78] sm:$0xff]  ;;  %282 = vst.msk [vmem:[#allocation2 + $0x58] sm:$0xff] %vm270_vm2, %v1379_v46 }
  0x1a   : > { %363 = vperm.xlu0 %1336, %v313_v15   ;;  %v1346_v44 = vld [vmem:[%s1707_s3] sm:$0xff]   ;;  %v1347_v45 = vld [vmem:[%s1707_s3 + $0x10] sm:$0xff]   ;;  %283 = vst.msk [vmem:[#allocation2 + $0x60] sm:$0xff] %vm270_vm2, %v1379_v46  ;;  %284 = vst.msk [vmem:[#allocation2 + $0x68] sm:$0xff] %vm270_vm2, %v1379_v46 }
  0x1b   : > { %368 = vperm.xlu1 %1337, %v314_v16   ;;  %1281 = vmatprep.mubr.bf16.mxu1 %v1347_v45  ;;  %285 = vst.msk [vmem:[#allocation2 + $0x70] sm:$0xff] %vm270_vm2, %v1379_v46  ;;  %286 = vst.msk [vmem:[#allocation2 + $0x78] sm:$0xff] %vm270_vm2, %v1379_v46 }
  0x1e   : > { %1250 = vmatmul.mubr.msk.bf16.gmra.mxu0 %vm441_vm0, %v1341_v13  ;;  %353 = vperm.xlu0 %1336, %v311_v17  }
  0x1f   : > { %1253 = vmatprep.mubr.msk.bf16.mxu0 %vm441_vm0, %v1342_v14  ;;  %358 = vperm.xlu1 %1337, %v312_v18  }
  0x22   : > { %343 = vperm.xlu0 %1336, %v309_v21  }
  0x23   : > { %348 = vperm.xlu1 %1337, %v310_v22  }
  0x26   : > { %1254 = vmatmul.mubr.msk.bf16.gmra.mxu0 %vm441_vm0, %v1343_v19  ;;  %333 = vperm.xlu0 %1336, %v307_v23  }
  0x27   : > { %1257 = vmatprep.mubr.msk.bf16.mxu0 %vm441_vm0, %v1344_v20  ;;  %338 = vperm.xlu1 %1337, %v308_v24  }
  0x2a   : > { %323 = vperm.xlu0 %1336, %v305_v26  }
  0x2b   : > { %328 = vperm.xlu1 %1337, %v306_v27  }
  0x2e   : > { %1258 = vmatmul.mubr.msk.bf16.gmra.mxu0 %vm441_vm0, %v1345_v25  ;;  %838 = vperm.xlu0 %1336, %v820_v28   ;;  %vm1098_vm0 = vcmask 982912  }
  0x2f   : > { %843 = vperm.xlu1 %1337, %v821_v29   ;;  %1277 = vmatprep.mubr.bf16.mxu0 %v1346_v44 }
  0x32   : > { %848 = vperm.xlu0 %1336, %v822_v30  }
  0x33   : > { %853 = vperm.xlu1 %1337, %v823_v31  }
  0x36   : > { %858 = vperm.xlu0 %1336, %v824_v32  }
  0x37   : > { %863 = vperm.xlu1 %1337, %v825_v33  }
  0x3a   : > { %868 = vperm.xlu0 %1336, %v826_v34  }
  0x3b   : > { %873 = vperm.xlu1 %1337, %v827_v35  }
  0x3e   : > { %878 = vperm.xlu0 %1336, %v828_v36  }
  0x3f   : > { %883 = vperm.xlu1 %1337, %v829_v37  }
  0x42   : > { %888 = vperm.xlu0 %1336, %v830_v38  }
  0x43   : > { %893 = vperm.xlu1 %1337, %v831_v39  }
  0x46   : > { %898 = vperm.xlu0 %1336, %v832_v40  }
  0x47   : > { %903 = vperm.xlu1 %1337, %v833_v41  }
  0x4a   : > { %908 = vperm.xlu0 %1336, %v834_v42  }
  0x4b   : > { %913 = vperm.xlu1 %1337, %v835_v43  }
  0x89   : > { %v394_v53 = vpop.permute.xlu0 %393 }
  0x8a   : > { %v384_v51 = vpop.permute.xlu1 %383 }
  0x8d   : > { %v399_v58 = vpop.permute.xlu0 %398 }
  0x8e   : > { %v389_v56 = vpop.permute.xlu1 %388 }
  0x91   : > { %v374_v63 = vpop.permute.xlu0 %373 }
  0x92   : > { %v379_v61 = vpop.permute.xlu1 %378 }
  0x95   : > { %v364_v5 = vpop.permute.xlu0 %363 }
  0x96   : > { %v369_v2 = vpop.permute.xlu1 %368 }
  0x99   : > { %v354_v19 = vpop.permute.xlu0 %353 }
  0x9a   : > { %v359_v14 = vpop.permute.xlu1 %358 }
  0x9d   : > { %v344_v29 = vpop.permute.xlu0 %343 }
  0x9e   : > { %v349_v25 = vpop.permute.xlu1 %348 }
  0xa1   : > { %v334_v38 = vpop.permute.xlu0 %333 }
  0xa2   : > { %v339_v35 = vpop.permute.xlu1 %338 }
  0xa6   : > { %v329_v44 = vpop.permute.xlu1 %328 }
  0xd6   : > { %v1584_v47 = vpop.f32.mrf.mxu0 }
  0xd7   : > { %v513_v42 = vadd.f32 %v1584_v47, %v334_v38 }
  0xd8   : > { %v1586_v48 = vpop.f32.mrf.mxu0 }
  0xda   : > { %v1588_v49 = vpop.f32.mrf.mxu0 }
  0xdb   : > { %v516_v39 = vadd.f32 %v1588_v49, %v339_v35 }
  0xdc   : > { %v1590_v50 = vpop.f32.mrf.mxu0 }
  0xdd   : > { %v570_v45 = vmax.f32 %v516_v39, 0.0  ;;  %v508_v46 = vadd.f32 %v1590_v50, %v329_v44  ;;  %v1348_v50 = vld [vmem:[%s1707_s3 + $0x8] sm:$0xff]  }
  0xde   : > { %v1251_v52 = vpop.f32.mrf.mxu0 }
  0xdf   : > { %v529_v30 = vadd.f32 %v1251_v52, %v354_v19  ;;  %v324_v52 = vpop.permute.xlu0 %323  ;;  %v757_v19 = vld [vmem:[#allocation2 + $0x28] sm:$0xff] }
  0xe0   : > { %v520_v54 = vpop.f32.mrf.mxu0  ;;  %v505_v49 = vadd.f32 %v1586_v48, %v324_v52  ;;  %v1349_v48 = vld [vmem:[%s1707_s3 + $0x18] sm:$0xff]  }
  0xe1   : > { %v573_v36 = vmax.f32 %v529_v30, 0.0  ;;  %v521_v37 = vadd.f32 %v520_v54, %v344_v29  ;;  %v760_v29 = vld [vmem:[#allocation2 + $0x40] sm:$0xff] }
  0xe2   : > { %v1252_v55 = vpop.f32.mrf.mxu0  ;;  %v567_v47 = vmax.f32 %v505_v49, 0.0 }
  0xe3   : > { %v532_v26 = vadd.f32 %v1252_v55, %v359_v14  ;;  %v571_v43 = vmax.f32 %v521_v37, 0.0  ;;  %v568_v55 = vmax.f32 %v508_v46, 0.0 }
  0xe4   : > { %v523_v57 = vpop.f32.mrf.mxu0 }
  0xe5   : > { %v574_v32 = vmax.f32 %v532_v26, 0.0  ;;  %v524_v33 = vadd.f32 %v523_v57, %v349_v25  ;;  %v1350_v57 = vld [vmem:[%s1707_s3 + $0x20] sm:$0xff]  }
  0xe6   : > { %v1255_v59 = vpop.f32.mrf.mxu0 }
  0xe7   : > { %v545_v15 = vadd.f32 %v1255_v59, %v374_v63  ;;  %v586_v40 = vpack.c.bf16 %v574_v32, %v573_v36  ;;  %v572_v41 = vmax.f32 %v524_v33, 0.0  ;;  %v1352_v59 = vld [vmem:[%s1707_s3 + $0x30] sm:$0xff]   ;;  %v1616_v63 = vpop.permute.xlu1 %843  ;;  %v763_v33 = vld [vmem:[#allocation2 + $0x58] sm:$0xff] }
  0xe8   : > { %v536_v60 = vpop.f32.mrf.mxu0 }
  0xe9   : > { %v577_v23 = vmax.f32 %v545_v15, 0.0  ;;  %v537_v24 = vadd.f32 %v536_v60, %v364_v5  ;;  %v1353_v60 = vld [vmem:[%s1707_s3 + $0x38] sm:$0xff]   ;;  %v756_v5 = vld [vmem:[#allocation2 + $0x20] sm:$0xff] }
  0xea   : > { %v1256_v62 = vpop.f32.mrf.mxu0 }
  0xeb   : > { %v548_v10 = vadd.f32 %v1256_v62, %v379_v61  ;;  %v575_v31 = vmax.f32 %v537_v24, 0.0  ;;  %v1614_v61 = vpop.permute.xlu0 %838  ;;  %v762_v24 = vld [vmem:[#allocation2 + $0x50] sm:$0xff] }
  0xec   : > { %v539_v0 = vpop.f32.mrf.mxu0 }
  0xed   : > { %v578_v20 = vmax.f32 %v548_v10, 0.0  ;;  %v540_v21 = vadd.f32 %v539_v0, %v369_v2  ;;  %v754_v0 = vld [vmem:[#allocation2 + $0x10] sm:$0xff] }
  0xee   : > { %v1259_v1 = vpop.f32.mrf.mxu0 }
  0xef   : > { %v561_v4 = vadd.f32 %v1259_v1, %v394_v53  ;;  %v588_v27 = vpack.c.bf16 %v578_v20, %v577_v23  ;;  %v576_v28 = vmax.f32 %v540_v21, 0.0  ;;  %v569_v53 = vmax.f32 %v513_v42, 0.0  ;;  %v849_v62 = vpop.permute.xlu0 %848  ;;  %v758_v1 = vld [vmem:[#allocation2 + $0x30] sm:$0xff] }
  0xf0   : > { %v552_v3 = vpop.f32.mrf.mxu0 }
  0xf1   : > { %v553_v7 = vadd.f32 %v552_v3, %v384_v51  ;;  %v581_v11 = vmax.f32 %v561_v4, 0.0  ;;  %v587_v34 = vpack.c.bf16 %v576_v28, %v575_v31  ;;  %v585_v51 = vpack.c.bf16 %v572_v41, %v571_v43  ;;  %v752_v4 = vld [vmem:[#allocation2] sm:$0xff] }
  0xf2   : > { %v1260_v6 = vpop.f32.mrf.mxu0  ;;  %v584_v54 = vpack.c.bf16 %v570_v45, %v569_v53  ;;  %v766_v53 = vld [vmem:[#allocation2 + $0x70] sm:$0xff] }
  0xf3   : > { %v564_v8 = vadd.f32 %v1260_v6, %v399_v58  ;;  %v579_v16 = vmax.f32 %v553_v7, 0.0  ;;  %v1351_v58 = vld [vmem:[%s1707_s3 + $0x28] sm:$0xff]   ;;  %v859_v6 = vpop.permute.xlu0 %858 }
  0xf4   : > { %v555_v9 = vpop.f32.mrf.mxu0 }
  0xf5   : > { %v582_v12 = vmax.f32 %v564_v8, 0.0  ;;  %v556_v13 = vadd.f32 %v555_v9, %v389_v56  ;;  %v583_v56 = vpack.c.bf16 %v568_v55, %v567_v47 }
  0xf7   : > { %v590_v17 = vpack.c.bf16 %v582_v12, %v581_v11  ;;  %v580_v18 = vmax.f32 %v556_v13, 0.0  ;;  %v755_v11 = vld [vmem:[#allocation2 + $0x18] sm:$0xff]  ;;  %v854_v13 = vpop.permute.xlu1 %853 }
  0xf8   : > { %v759_v12 = vld [vmem:[#allocation2 + $0x38] sm:$0xff] }
  0xf9   : > { %v589_v22 = vpack.c.bf16 %v580_v18, %v579_v16  ;;  %1261 = vmatprep.subr.bf16.mxu0 %v590_v17  ;;  %1293 = vmatprep.subr.bf16.mxu1 %v590_v17  ;;  %v753_v18 = vld [vmem:[#allocation2 + $0x8] sm:$0xff] }
  0xfa   : > { %1262 = vmatpush3.bf16.msra.mxu0 %v590_v17  ;;  %1301 = vmatpush3.bf16.msra.mxu1 %v590_v17 }
  0xfb   : > { %1263 = vmatprep.subr.bf16.mxu0 %v589_v22  ;;  %1294 = vmatprep.subr.bf16.mxu1 %v589_v22  ;;  %v1626_v31 = vpop.permute.xlu1 %863 }
  0xfe   : > { %1264 = vmatpush3.bf16.msra.mxu0 %v589_v22  ;;  %1302 = vmatpush3.bf16.msra.mxu1 %v589_v22 }
  0xff   : > { %1265 = vmatprep.subr.bf16.mxu0 %v588_v27  ;;  %1295 = vmatprep.subr.bf16.mxu1 %v588_v27  ;;  %v874_v47 = vpop.permute.xlu1 %873 }
 0x102   : > { %1266 = vmatpush3.bf16.msra.mxu0 %v588_v27  ;;  %1303 = vmatpush3.bf16.msra.mxu1 %v588_v27  ;;  %v869_v27 = vpop.permute.xlu0 %868 }
 0x103   : > { %1267 = vmatprep.subr.bf16.mxu0 %v587_v34  ;;  %1296 = vmatprep.subr.bf16.mxu1 %v587_v34 }
 0x106   : > { %1268 = vmatpush3.bf16.msra.mxu0 %v587_v34  ;;  %1304 = vmatpush3.bf16.msra.mxu1 %v587_v34 }
 0x107   : > { %1269 = vmatprep.subr.bf16.mxu0 %v586_v40  ;;  %1297 = vmatprep.subr.bf16.mxu1 %v586_v40 }
 0x10a   : > { %1270 = vmatpush3.bf16.msra.mxu0 %v586_v40  ;;  %1305 = vmatpush3.bf16.msra.mxu1 %v586_v40  ;;  %v761_v40 = vld [vmem:[#allocation2 + $0x48] sm:$0xff] }
 0x10b   : > { %1271 = vmatprep.subr.bf16.mxu0 %v585_v51  ;;  %1298 = vmatprep.subr.bf16.mxu1 %v585_v51 }
 0x10e   : > { %1272 = vmatpush3.bf16.msra.mxu0 %v585_v51  ;;  %1306 = vmatpush3.bf16.msra.mxu1 %v585_v51  ;;  %v879_v51 = vpop.permute.xlu0 %878 }
 0x10f   : > { %1273 = vmatprep.subr.bf16.mxu0 %v584_v54  ;;  %1299 = vmatprep.subr.bf16.mxu1 %v584_v54 }
 0x112   : > { %1274 = vmatpush3.bf16.msra.mxu0 %v584_v54  ;;  %1307 = vmatpush3.bf16.msra.mxu1 %v584_v54 }
 0x113   : > { %1275 = vmatprep.subr.bf16.mxu0 %v583_v56  ;;  %1300 = vmatprep.subr.bf16.mxu1 %v583_v56 }
 0x116   : > { %1276 = vmatpush3.bf16.msra.mxu0 %v583_v56  ;;  %1308 = vmatpush3.bf16.msra.mxu1 %v583_v56 }
 0x119   : > { %1278 = vmatmul.mubr.bf16.vlgmr.msra.gmra.mxu0 %v1348_v50  ;;  %1282 = vmatmul.mubr.bf16.vlgmr.msra.gmra.mxu1 %v1349_v48  ;;  %v764_v48 = vld [vmem:[#allocation2 + $0x60] sm:$0xff] }
 0x11a   : > { %1285 = vmatprep.mubr.bf16.mxu1 %v1350_v57 }
 0x121   : > { %1286 = vmatmul.mubr.bf16.gmra.mxu1 %v1351_v58 }
 0x122   : > { %1289 = vmatprep.mubr.bf16.mxu1 %v1352_v59 }
 0x129   : > { %1290 = vmatmul.mubr.bf16.gmra.mxu1 %v1353_v60 }
 0x1d9   : > { %v1279_v2 = vpop.f32.mrf.mxu0  ;;  %v1283_v3 = vpop.f32.mrf.mxu1 }
 0x1da   : > { %v770_v7 = vmax.f32 %v754_v0, %v1279_v2  ;;  %v774_v8 = vmax.f32 %v758_v1, %v1283_v3  ;;  %v767_v1 = vld [vmem:[#allocation2 + $0x78] sm:$0xff] }
 0x1db   : > { %v689_v9 = vpop.f32.mrf.mxu0  ;;  %v705_v10 = vpop.f32.mrf.mxu1 }
 0x1dc   : > { %787 = vst.msk [vmem:[#allocation2 + $0x10] sm:$0xff] %vm270_vm2, %v770_v7  ;;  %791 = vst.msk [vmem:[#allocation2 + $0x30] sm:$0xff] %vm270_vm2, %v774_v8  ;;  %v768_v14 = vmax.f32 %v752_v4, %v689_v9  ;;  %v772_v15 = vmax.f32 %v756_v5, %v705_v10  ;;  %v889_v4 = vpop.permute.xlu0 %888 }
 0x1dd   : > { %v1280_v16 = vpop.f32.mrf.mxu0  ;;  %v1284_v17 = vpop.f32.mrf.mxu1 }
 0x1de   : > { %785 = vst.msk [vmem:[#allocation2] sm:$0xff] %vm270_vm2, %v768_v14  ;;  %789 = vst.msk [vmem:[#allocation2 + $0x20] sm:$0xff] %vm270_vm2, %v772_v15  ;;  %v771_v20 = vmax.f32 %v755_v11, %v1280_v16  ;;  %v775_v21 = vmax.f32 %v759_v12, %v1284_v17  ;;  %v884_v11 = vpop.permute.xlu1 %883 }
 0x1df   : > { %v692_v22 = vpop.f32.mrf.mxu0  ;;  %v708_v23 = vpop.f32.mrf.mxu1 }
 0x1e0   : > { %788 = vst.msk [vmem:[#allocation2 + $0x18] sm:$0xff] %vm270_vm2, %v771_v20  ;;  %792 = vst.msk [vmem:[#allocation2 + $0x38] sm:$0xff] %vm270_vm2, %v775_v21  ;;  %v769_v25 = vmax.f32 %v753_v18, %v692_v22  ;;  %v773_v26 = vmax.f32 %v757_v19, %v708_v23  ;;  %v899_v20 = vpop.permute.xlu0 %898 }
 0x1e1   : > { %v1287_v28 = vpop.f32.mrf.mxu1 }
 0x1e2   : > { %786 = vst.msk [vmem:[#allocation2 + $0x8] sm:$0xff] %vm270_vm2, %v769_v25  ;;  %790 = vst.msk [vmem:[#allocation2 + $0x28] sm:$0xff] %vm270_vm2, %v773_v26  ;;  %v778_v30 = vmax.f32 %v762_v24, %v1287_v28  ;;  %v894_v22 = vpop.permute.xlu1 %893 }
 0x1e3   : > { %v721_v32 = vpop.f32.mrf.mxu1  ;;  %v810_v34 = vld [vmem:[#allocation2 + $0x30] sm:$0xff] }
 0x1e4   : > { %v806_v35 = vld [vmem:[#allocation2 + $0x10] sm:$0xff]  ;;  %795 = vst.msk [vmem:[#allocation2 + $0x50] sm:$0xff] %vm270_vm2, %v778_v30  ;;  %v776_v36 = vmax.f32 %v760_v29, %v721_v32  ;;  %v922_v37 = vadd.f32 %v869_v27, %v810_v34  ;;  %v909_v30 = vpop.permute.xlu0 %908 }
 0x1e5   : > { %v918_v38 = vadd.f32 %v849_v62, %v806_v35  ;;  %v1288_v39 = vpop.f32.mrf.mxu1  ;;  %v808_v41 = vld [vmem:[#allocation2 + $0x20] sm:$0xff] }
 0x1e6   : > { %v804_v42 = vld [vmem:[#allocation2] sm:$0xff]  ;;  %793 = vst.msk [vmem:[#allocation2 + $0x40] sm:$0xff] %vm270_vm2, %v776_v36  ;;  %v779_v43 = vmax.f32 %v763_v33, %v1288_v39  ;;  %v950_v44 = vsel %vm270_vm2, %v922_v37, -inf  ;;  %v920_v46 = vadd.f32 %v859_v6, %v808_v41  ;;  %v765_v6 = vld [vmem:[#allocation2 + $0x68] sm:$0xff]  ;;  %v904_v35 = vpop.permute.xlu1 %903 }
 0x1e7   : > { %v938_v45 = vsel %vm270_vm2, %v918_v38, -inf  ;;  %951 = vmax.xlane.f32.xlu1 %v950_v44  ;;  %v724_v52 = vpop.f32.mrf.mxu1  ;;  %v916_v49 = vadd.f32 %v1614_v61, %v804_v42  ;;  %v807_v54 = vld [vmem:[#allocation2 + $0x18] sm:$0xff] }
 0x1e8   : > { %939 = vmax.xlane.f32.xlu0 %v938_v45  ;;  %796 = vst.msk [vmem:[#allocation2 + $0x58] sm:$0xff] %vm270_vm2, %v779_v43  ;;  %v777_v55 = vmax.f32 %v761_v40, %v724_v52  ;;  %v944_v50 = vsel %vm270_vm2, %v920_v46, -inf  ;;  %v919_v60 = vadd.f32 %v854_v13, %v807_v54  ;;  %v811_v0 = vld [vmem:[#allocation2 + $0x38] sm:$0xff]  ;;  %v996_v45 = vlaneseq }
 0x1e9   : > { %v1291_v56 = vpop.f32.mrf.mxu1  ;;  %v805_v57 = vld [vmem:[#allocation2 + $0x8] sm:$0xff]  ;;  %v932_v59 = vsel %vm270_vm2, %v916_v49, -inf  ;;  %v923_v7 = vadd.f32 %v874_v47, %v811_v0 }
 0x1ea   : > { %794 = vst.msk [vmem:[#allocation2 + $0x48] sm:$0xff] %vm270_vm2, %v777_v55  ;;  %v782_v58 = vmax.f32 %v766_v53, %v1291_v56  ;;  %v917_v62 = vadd.f32 %v1616_v63, %v805_v57  ;;  %v941_v9 = vsel %vm270_vm2, %v919_v60, -inf  ;;  %v809_v13 = vld [vmem:[#allocation2 + $0x28] sm:$0xff]  ;;  %v914_v41 = vpop.permute.xlu1 %913  ;;  %v1655_v46 = vand.u32 127, %v996_v45 }
 0x1eb   : > { %945 = vmax.xlane.f32.xlu1 %v944_v50  ;;  %v737_v61 = vpop.f32.mrf.mxu1  ;;  %v814_v2 = vld [vmem:[#allocation2 + $0x50] sm:$0xff]  ;;  %v953_v16 = vsel %vm270_vm2, %v923_v7, -inf  ;;  %v921_v18 = vadd.f32 %v1626_v31, %v809_v13  ;;  %v1658_v49 = vshrl.u32 %v996_v45, 7 }
 0x1ec   : > { %933 = vmax.xlane.f32.xlu0 %v932_v59  ;;  %799 = vst.msk [vmem:[#allocation2 + $0x70] sm:$0xff] %vm270_vm2, %v782_v58  ;;  %v780_v3 = vmax.f32 %v764_v48, %v737_v61  ;;  %v935_v63 = vsel %vm270_vm2, %v917_v62, -inf  ;;  %v926_v10 = vadd.f32 %v889_v4, %v814_v2  ;;  %v1002_v53 = vadd.s32 4294967288, %v1655_v46 }
 0x1ed   : > { %v1292_v5 = vpop.f32.mrf.mxu1  ;;  %v812_v14 = vld [vmem:[#allocation2 + $0x40] sm:$0xff]  ;;  %v947_v24 = vsel %vm270_vm2, %v921_v18, -inf  ;;  %v1009_v54 = vadd.s32 4294967280, %v1655_v46  ;;  %v1016_v56 = vadd.s32 4294967272, %v1655_v46  ;;  %v1000_v50 = vsub.s32 %v1655_v46, %v1658_v49 }
 0x1ee   : > { %797 = vst.msk [vmem:[#allocation2 + $0x60] sm:$0xff] %vm270_vm2, %v780_v3  ;;  %v783_v8 = vmax.f32 %v767_v1, %v1292_v5  ;;  %v962_v17 = vsel %vm270_vm2, %v926_v10, -inf  ;;  %v924_v19 = vadd.f32 %v879_v51, %v812_v14  ;;  %v1005_v48 = vsub.s32 %v1002_v53, %v1658_v49 }
 0x1ef   : > { %v740_v12 = vpop.f32.mrf.mxu1  ;;  %936 = vmax.xlane.f32.xlu1 %v935_v63  ;;  %v815_v21 = vld [vmem:[#allocation2 + $0x58] sm:$0xff]  ;;  %v1012_v57 = vsub.s32 %v1009_v54, %v1658_v49  ;;  %v1023_v58 = vadd.s32 4294967264, %v1655_v46  ;;  %v1019_v59 = vsub.s32 %v1016_v56, %v1658_v49  ;;  %v1030_v1 = vadd.s32 4294967256, %v1655_v46 }
 0x1f0   : > { %942 = vmax.xlane.f32.xlu0 %v941_v9  ;;  %800 = vst.msk [vmem:[#allocation2 + $0x78] sm:$0xff] %vm270_vm2, %v783_v8  ;;  %v781_v15 = vmax.f32 %v765_v6, %v740_v12  ;;  %v956_v25 = vsel %vm270_vm2, %v924_v19, -inf  ;;  %v927_v26 = vadd.f32 %v894_v22, %v815_v21  ;;  %v1037_v2 = vadd.s32 4294967248, %v1655_v46 }
 0x1f1   : > { %v813_v28 = vld [vmem:[#allocation2 + $0x48] sm:$0xff]  ;;  %v1026_v5 = vsub.s32 %v1023_v58, %v1658_v49  ;;  %v1044_v63 = vadd.s32 4294967240, %v1655_v46  ;;  %v1033_v10 = vsub.s32 %v1030_v1, %v1658_v49  ;;  %v1058_v19 = vadd.s32 4294967224, %v1655_v46 }
 0x1f2   : > { %798 = vst.msk [vmem:[#allocation2 + $0x68] sm:$0xff] %vm270_vm2, %v781_v15  ;;  %v965_v31 = vsel %vm270_vm2, %v927_v26, -inf  ;;  %v925_v33 = vadd.f32 %v884_v11, %v813_v28  ;;  %v1040_v11 = vsub.s32 %v1037_v2, %v1658_v49  ;;  %v1051_v15 = vadd.s32 4294967232, %v1655_v46 }
 0x1f3   : > { %963 = vmax.xlane.f32.xlu1 %v962_v17  ;;  %v818_v29 = vld [vmem:[#allocation2 + $0x70] sm:$0xff]  ;;  %v1065_v21 = vadd.s32 4294967216, %v1655_v46  ;;  %v1079_v28 = vadd.s32 4294967200, %v1655_v46 }
 0x1f4   : > { %954 = vmax.xlane.f32.xlu0 %v953_v16  ;;  %v930_v34 = vadd.f32 %v909_v30, %v818_v29  ;;  %v959_v37 = vsel %vm270_vm2, %v925_v33, -inf  ;;  %v1047_v16 = vsub.s32 %v1044_v63, %v1658_v49  ;;  %v1054_v26 = vsub.s32 %v1051_v15, %v1658_v49 }
 0x1f5   : > { %v816_v23 = vld [vmem:[#allocation2 + $0x60] sm:$0xff]  ;;  %v1061_v30 = vsub.s32 %v1058_v19, %v1658_v49 }
 0x1f6   : > { %v928_v27 = vadd.f32 %v899_v20, %v816_v23  ;;  %v974_v38 = vsel %vm270_vm2, %v930_v34, -inf }
 0x1f7   : > { %957 = vmax.xlane.f32.xlu1 %v956_v25  ;;  %v819_v40 = vld [vmem:[#allocation2 + $0x78] sm:$0xff] }
 0x1f8   : > { %948 = vmax.xlane.f32.xlu0 %v947_v24  ;;  %v968_v32 = vsel %vm270_vm2, %v928_v27, -inf  ;;  %v931_v43 = vadd.f32 %v914_v41, %v819_v40  ;;  %v1072_v24 = vadd.s32 4294967208, %v1655_v46 }
 0x1f9   : > { %v817_v36 = vld [vmem:[#allocation2 + $0x68] sm:$0xff] }
 0x1fa   : > { %v929_v39 = vadd.f32 %v904_v35, %v817_v36  ;;  %v977_v44 = vsel %vm270_vm2, %v931_v43, -inf  ;;  %v1075_v34 = vsub.s32 %v1072_v24, %v1658_v49 }
 0x1fb   : > { %969 = vmax.xlane.f32.xlu1 %v968_v32  ;;  %v1068_v32 = vsub.s32 %v1065_v21, %v1658_v49 }
 0x1fc   : > { %966 = vmax.xlane.f32.xlu0 %v965_v31  ;;  %v971_v42 = vsel %vm270_vm2, %v929_v39, -inf  ;;  %v1086_v31 = vadd.s32 4294967192, %v1655_v46  ;;  %v1093_v39 = vadd.s32 4294967184, %v1655_v46 }
 0x1fe   : > { %v1089_v41 = vsub.s32 %v1086_v31, %v1658_v49  ;;  %v1096_v54 = vsub.s32 %v1093_v39, %v1658_v49 }
 0x1ff   : > { %975 = vmax.xlane.f32.xlu1 %v974_v38 }
 0x200   : > { %960 = vmax.xlane.f32.xlu0 %v959_v37  ;;  %v1082_v37 = vsub.s32 %v1079_v28, %v1658_v49 }
 0x204   : > { %972 = vmax.xlane.f32.xlu0 %v971_v42  ;;  %v1100_v42 = vadd.s32 4294967176, %v1655_v46 }
 0x208   : > { %978 = vmax.xlane.f32.xlu0 %v977_v44 }
 0x270   : > { %v952_v51 = vpop.xlane.xlu1 %951 }
 0x271   : > { %v940_v52 = vpop.xlane.xlu0 %939  ;;  %v1041_v20 = vrot.slane %v952_v51, %v1040_v11 }
 0x272   : > { %v1013_v3 = vrot.slane %v940_v52, %v1012_v57 }
 0x274   : > { %v946_v55 = vpop.xlane.xlu1 %945 }
 0x275   : > { %v934_v47 = vpop.xlane.xlu0 %933  ;;  %v1027_v13 = vrot.slane %v946_v55, %v1026_v5 }
 0x276   : > { %v1001_v0 = vrot.slane %v934_v47, %v1000_v50 }
 0x278   : > { %v937_v62 = vpop.xlane.xlu1 %936 }
 0x279   : > { %v943_v60 = vpop.xlane.xlu0 %942  ;;  %v1006_v61 = vrot.slane %v937_v62, %v1005_v48  ;;  %v1103_v48 = vsub.s32 %v1100_v42, %v1658_v49 }
 0x27a   : > { %v1020_v9 = vrot.slane %v943_v60, %v1019_v59 }
 0x27b   : > { %v1008_v4 = vsel %vm1007_vm3, %v1006_v61, %v1001_v0 }
 0x27c   : > { %v1015_v6 = vsel %vm1014_vm4, %v1013_v3, %v1008_v4  ;;  %v964_v8 = vpop.xlane.xlu1 %963 }
 0x27d   : > { %v955_v7 = vpop.xlane.xlu0 %954  ;;  %v1022_v12 = vsel %vm1021_vm5, %v1020_v9, %v1015_v6  ;;  %v1069_v43 = vrot.slane %v964_v8, %v1068_v32 }
 0x27e   : > { %v1029_v22 = vsel %vm1028_vm6, %v1027_v13, %v1022_v12  ;;  %v1048_v29 = vrot.slane %v955_v7, %v1047_v16 }
 0x280   : > { %v958_v18 = vpop.xlane.xlu1 %957 }
 0x281   : > { %v949_v14 = vpop.xlane.xlu0 %948  ;;  %v1055_v36 = vrot.slane %v958_v18, %v1054_v26 }
 0x282   : > { %v1034_v17 = vrot.slane %v949_v14, %v1033_v10 }
 0x284   : > { %v1036_v23 = vsel %vm1035_vm7, %v1034_v17, %v1029_v22  ;;  %v970_v35 = vpop.xlane.xlu1 %969 }
 0x285   : > { %v1043_v25 = vsel %vm1042_vm8, %v1041_v20, %v1036_v23  ;;  %v967_v27 = vpop.xlane.xlu0 %966  ;;  %v1083_v52 = vrot.slane %v970_v35, %v1082_v37 }
 0x286   : > { %v1050_v33 = vsel %vm1049_vm9, %v1048_v29, %v1043_v25  ;;  %v1076_v45 = vrot.slane %v967_v27, %v1075_v34 }
 0x287   : > { %v1057_v44 = vsel %vm1056_vm10, %v1055_v36, %v1050_v33 }
 0x288   : > { %v976_v47 = vpop.xlane.xlu1 %975 }
 0x289   : > { %v961_v38 = vpop.xlane.xlu0 %960  ;;  %v1097_v58 = vrot.slane %v976_v47, %v1096_v54 }
 0x28a   : > { %v1062_v40 = vrot.slane %v961_v38, %v1061_v30 }
 0x28c   : > { %v1064_v51 = vsel %vm1063_vm11, %v1062_v40, %v1057_v44 }
 0x28d   : > { %v1071_v53 = vsel %vm1070_vm12, %v1069_v43, %v1064_v51  ;;  %v973_v55 = vpop.xlane.xlu0 %972 }
 0x28e   : > { %v1078_v56 = vsel %vm1077_vm13, %v1076_v45, %v1071_v53  ;;  %v1090_v50 = vrot.slane %v973_v55, %v1089_v41 }
 0x28f   : > { %v1085_v57 = vsel %vm1084_vm14, %v1083_v52, %v1078_v56 }
 0x290   : > { %v1092_v46 = vsel %vm1091_vm15, %v1090_v50, %v1085_v57 }
 0x291   : > { %v979_v59 = vpop.xlane.xlu0 %978  ;;  %v1099_v62 = vsel %vm1098_vm0, %v1097_v58, %v1092_v46 }
 0x292   : > { %v1104_v60 = vrot.slane %v979_v59, %v1103_v48 }
 0x294   : > { %v1106_v0 = vsel %vm1105_vm1, %v1104_v60, %v1099_v62 }
 0x295   : > { %1108 = vst [vmem:[%s264_s15] sm:$0x1] %v1106_v0 }
 0x296 PF: > { %s15_s20 = sadd.s32 1, %s1376_s20   ;;  %s1710_s18 = smov %s1372_s19 }
 0x297   : > { %p12_p5 = scmp.ge.s32.totalorder %s15_s20, 4   ;;  %s1711_s19 = smov %s1713_s21 }
 0x299   :  { %14 = sbr.rel (!%p12_p5) target bundleno = 2 (0x2), region = 78 }

</bundles_post_ra>
